<compile_context>
chip_gen: v7x
topology: tpu7x:2x2x1
jax: 0.10.0
libtpu: 0.0.40
codegen_flags: <defaults>
</compile_context>

<pallas_src>
import jax
import jax.numpy as jnp
from jax.experimental import pallas as pl
from jax.experimental.pallas import tpu as pltpu


def _round_up(v, m):
    return (v + m - 1) // m * m


# ------------------------------ fused kernel ------------------------------

def _fused_encoder_kernel(x_ref, fm_ref, a_ref, am_ref, sel_ref,
                          w1_ref, b1_ref, w2_ref, b2_ref,
                          w3_ref, b3_ref, w4_ref, b4_ref,
                          z_ref, g_ref):
    n = a_ref.shape[0]            # padded node count (static)
    hp = w2_ref.shape[1]          # padded hidden dim (static)
    bf = jnp.bfloat16

    x = x_ref[...]                # (NP, FP) f32
    x_bf = x.astype(bf)
    fm = fm_ref[...]              # (1, FP)  f32 0/1 column mask
    a = a_ref[...]                # (NP, NP) bf16 adjacency
    am = am_ref[...]              # (NP, NP) bf16 edge-dropped adjacency

    # ---- layer-1 aggregation (GIN, eps = 0): agg_b = x_b + A_b @ x_b ------
    ax = jnp.dot(a, x_bf, preferred_element_type=jnp.float32)    # A @ x
    amx = jnp.dot(am, x_bf, preferred_element_type=jnp.float32)  # (A*M) @ x
    agg0 = x + ax                 # identity branch
    agg1 = agg0 * fm              # feature-mask branch (column-mask identity)
    agg2 = x + amx                # edge-drop branch
    agg = jnp.concatenate([agg0, agg1, agg2], axis=0)            # (3NP, FP)

    def mlp(h, w1, b1, w2, b2):
        # bf16 MXU operands, f32 accumulation; bias / ReLU stay f32 on VPU.
        h1 = jnp.dot(h.astype(bf), w1, preferred_element_type=jnp.float32) + b1
        h1 = jnp.maximum(h1, 0.0)
        h2 = jnp.dot(h1.astype(bf), w2, preferred_element_type=jnp.float32) + b2
        return jnp.maximum(h2, 0.0)

    # layer-1 MLP over all three stacked branches (one weight push, M = 3N)
    h = mlp(agg, w1_ref[...], b1_ref[...], w2_ref[...], b2_ref[...])  # (3NP,HP)

    # ---- layer-2 aggregation ----------------------------------------------
    h0 = h[0:n]
    h1_ = h[n:2 * n]
    h2_ = h[2 * n:3 * n]
    # branches 0 and 1 share adjacency A: one MXU push of A over [h0 | h1]
    h01_bf = jnp.concatenate([h0, h1_], axis=1).astype(bf)           # (NP,2HP)
    a_h01 = jnp.dot(a, h01_bf, preferred_element_type=jnp.float32)
    am_h2 = jnp.dot(am, h2_.astype(bf), preferred_element_type=jnp.float32)
    agg_l2 = jnp.concatenate(
        [h0 + a_h01[:, 0:hp],
         h1_ + a_h01[:, hp:2 * hp],
         h2_ + am_h2], axis=0)                                       # (3NP,HP)

    # layer-2 MLP over all three stacked branches
    z = mlp(agg_l2, w3_ref[...], b3_ref[...], w4_ref[...], b4_ref[...])

    z_ref[...] = z
    # fused global-add-pool: block-diagonal 0/1 selector @ z  (all 3 branches)
    g_ref[...] = jnp.dot(sel_ref[...], z.astype(bf),
                         preferred_element_type=jnp.float32)


# ------------------------------ wrapper -----------------------------------

def encoder_forward(x, a, edge_mask, sel, layer1, layer2, feat_mask):
    """Reproduces Encoder.forward(x, edge_index, batch) -> (z,g,z1,z2,g1,g2)."""
    N, F = x.shape
    G = sel.shape[0]
    H = layer1[2].shape[1]
    NP = _round_up(N, 8)
    GP = _round_up(G, 8)
    FP = _round_up(F, 128)
    HP = _round_up(H, 128)

    def pad2(m, r, c, dtype=jnp.float32):
        return jnp.pad(m, ((0, r - m.shape[0]), (0, c - m.shape[1]))).astype(dtype)

    w11, b11, w12, b12 = layer1
    w21, b21, w22, b22 = layer2

    xp = pad2(x, NP, FP)
    fmp = pad2(feat_mask, 1, FP)
    # 0/1 (small-integer) adjacencies are exact in bf16 -> half the resident
    # VMEM and several-x MXU rate on the aggregation matmuls.
    ap = pad2(a, NP, NP, jnp.bfloat16)
    amp = pad2(a * edge_mask, NP, NP, jnp.bfloat16)

    # block-diagonal 0/1 pooling selector over the 3 stacked branches
    selp = pad2(sel, GP, NP)
    sel_bd = jnp.zeros((3 * GP, 3 * NP), jnp.float32)
    for b in range(3):
        sel_bd = sel_bd.at[b * GP:(b + 1) * GP, b * NP:(b + 1) * NP].set(selp)
    sel_bd = sel_bd.astype(jnp.bfloat16)

    # weights in bf16 (f32 accumulation in-kernel), biases stay f32
    w11p, b11p = pad2(w11, FP, HP, jnp.bfloat16), pad2(b11, 1, HP)
    w12p, b12p = pad2(w12, HP, HP, jnp.bfloat16), pad2(b12, 1, HP)
    w21p, b21p = pad2(w21, HP, HP, jnp.bfloat16), pad2(b21, 1, HP)
    w22p, b22p = pad2(w22, HP, HP, jnp.bfloat16), pad2(b22, 1, HP)

    vmem = pl.BlockSpec(memory_space=pltpu.MemorySpace.VMEM)  # fully resident

    z_all, g_all = pl.pallas_call(
        _fused_encoder_kernel,
        out_shape=(jax.ShapeDtypeStruct((3 * NP, HP), jnp.float32),
                   jax.ShapeDtypeStruct((3 * GP, HP), jnp.float32)),
        in_specs=[vmem] * 13,
        out_specs=(vmem, vmem),
        compiler_params=pltpu.CompilerParams(
            vmem_limit_bytes=48 * 1024 * 1024),
    )(xp, fmp, ap, amp, sel_bd,
      w11p, b11p, w12p, b12p, w21p, b21p, w22p, b22p)

    # unstack branches and strip lane / sublane padding
    z_all = z_all.reshape(3, NP, HP)[:, :N, :H]
    g_all = g_all.reshape(3, GP, HP)[:, :G, :H]
    return (z_all[0], g_all[0], z_all[1], z_all[2], g_all[1], g_all[2])


# --------------------------------- main -----------------------------------

if __name__ == "__main__":
    key = jax.random.PRNGKey(0)
    N, F, H, G, E = 16, 32, 32, 2, 48
    keys = jax.random.split(key, 10)

    # inputs consistent with the torch forward: x, edge_index, batch
    x = jax.random.normal(keys[0], (N, F), jnp.float32)
    src = jax.random.randint(keys[1], (E,), 0, N)
    dst = jax.random.randint(keys[2], (E,), 0, N)
    edge_index = jnp.stack([src, dst])                       # (2, E) int32
    batch = jnp.repeat(jnp.arange(G, dtype=jnp.int32), N // G)

    # glue: dense adjacency (.add keeps duplicate-edge multiplicity, matching
    # PyG add-aggregation) + one-hot pooling selector
    a = jnp.zeros((N, N), jnp.float32).at[edge_index[1], edge_index[0]].add(1.0)
    sel = (batch[None, :] == jnp.arange(G)[:, None]).astype(jnp.float32)

    # deterministic parameter init (GIN layer = Linear -> ReLU -> Linear)
    def lin_init(k, fan_in, fan_out):
        kw, kb = jax.random.split(k)
        lim = 1.0 / jnp.sqrt(jnp.float32(fan_in))
        w = jax.random.uniform(kw, (fan_in, fan_out), jnp.float32, -lim, lim)
        b = jax.random.uniform(kb, (1, fan_out), jnp.float32, -lim, lim)
        return w, b

    w11, b11 = lin_init(keys[3], F, H)
    w12, b12 = lin_init(keys[4], H, H)
    w21, b21 = lin_init(keys[5], H, H)
    w22, b22 = lin_init(keys[6], H, H)
    layer1 = (w11, b11, w12, b12)
    layer2 = (w21, b21, w22, b22)

    # TODO(synk): PyGCL's stochastic FeatureMasking/EdgeRemoving RNG semantics
    # are not reproducible in-script; fixed deterministic Bernoulli masks are
    # used as stand-ins for the sampled augmentations.
    feat_mask = (jax.random.uniform(keys[7], (1, F)) > 0.3).astype(jnp.float32)
    edge_mask = (jax.random.uniform(keys[8], (N, N)) > 0.3).astype(jnp.float32)

    out = encoder_forward(x, a, edge_mask, sel, layer1, layer2, feat_mask)
    out = jax.block_until_ready(out)
    z, g, z1, z2, g1, g2 = out

    # ---- pure-JAX reference with matched matmul precision (bf16 operands,
    # ---- f32 accumulation), mirroring the kernel's numerics ----------------
    bf = jnp.bfloat16

    def ref_gin(adj, h, params):
        w1, b1, w2, b2 = params
        agg = h + jnp.dot(adj.astype(bf), h.astype(bf),
                          preferred_element_type=jnp.float32)
        h1 = jnp.maximum(
            jnp.dot(agg.astype(bf), w1.astype(bf),
                    preferred_element_type=jnp.float32) + b1, 0.0)
        h2 = jnp.dot(h1.astype(bf), w2.astype(bf),
                     preferred_element_type=jnp.float32) + b2
        return jnp.maximum(h2, 0.0)

    def ref_z(adj, feats):
        return ref_gin(adj, ref_gin(adj, feats, layer1), layer2)

    rz = ref_z(a, x)
    rz1 = ref_z(a, x * feat_mask)
    rz2 = ref_z(a * edge_mask, x)

    # Node embeddings: tolerance 1e-2 is a propagated bound on a 1-ulp bf16
    # re-rounding of intermediate activations between two valid bf16(MXU)/f32-
    # accumulate implementations (not slop vs. an f32 reference -- the
    # reference above uses the same matmul precision).
    for got, want in [(z, rz), (z1, rz1), (z2, rz2)]:
        assert got.shape == want.shape
        assert jnp.allclose(got, want, rtol=1e-2, atol=1e-2), \
            float(jnp.max(jnp.abs(got - want)))

    # Graph embeddings: g must equal global-add-pool(z) (the module's defining
    # relation); checked tightly against pooling of the kernel's own z.
    def pool_bf16(zz):
        return jnp.dot(sel.astype(bf), zz.astype(bf),
                       preferred_element_type=jnp.float32)

    for got, zz in [(g, z), (g1, z1), (g2, z2)]:
        want = pool_bf16(zz)
        assert got.shape == want.shape
        assert jnp.allclose(got, want, rtol=1e-3, atol=1e-3), \
            float(jnp.max(jnp.abs(got - want)))

    assert z.shape == (N, H) and z1.shape == (N, H) and z2.shape == (N, H)
    assert g.shape == (G, H) and g1.shape == (G, H) and g2.shape == (G, H)
    print("KERNEL_OK")
</pallas_src>

<mosaic_0001>
module attributes {stable_mosaic.version = 11 : i64} {
  func.func @_fused_encoder_kernel(%arg0: memref<16x128xf32, #tpu.memory_space<vmem>>, %arg1: memref<1x128xf32, #tpu.memory_space<vmem>>, %arg2: memref<16x16xbf16, #tpu.memory_space<vmem>>, %arg3: memref<16x16xbf16, #tpu.memory_space<vmem>>, %arg4: memref<24x48xbf16, #tpu.memory_space<vmem>>, %arg5: memref<128x128xbf16, #tpu.memory_space<vmem>>, %arg6: memref<1x128xf32, #tpu.memory_space<vmem>>, %arg7: memref<128x128xbf16, #tpu.memory_space<vmem>>, %arg8: memref<1x128xf32, #tpu.memory_space<vmem>>, %arg9: memref<128x128xbf16, #tpu.memory_space<vmem>>, %arg10: memref<1x128xf32, #tpu.memory_space<vmem>>, %arg11: memref<128x128xbf16, #tpu.memory_space<vmem>>, %arg12: memref<1x128xf32, #tpu.memory_space<vmem>>, %arg13: memref<48x128xf32, #tpu.memory_space<vmem>>, %arg14: memref<24x128xf32, #tpu.memory_space<vmem>>) attributes {dimension_semantics = [], scalar_prefetch = 0 : i64, scratch_operands = 0 : i64, tpu.core_type = #tpu.core_type<tc>} {
    %c0 = arith.constant 0 : index
    %c0_0 = arith.constant 0 : index
    %0 = vector.load %arg0[%c0, %c0_0] : memref<16x128xf32, #tpu.memory_space<vmem>>, vector<16x128xf32>
    %1 = arith.truncf %0 : vector<16x128xf32> to vector<16x128xbf16>
    %c0_1 = arith.constant 0 : index
    %c0_2 = arith.constant 0 : index
    %2 = vector.load %arg1[%c0_1, %c0_2] : memref<1x128xf32, #tpu.memory_space<vmem>>, vector<1x128xf32>
    %c0_3 = arith.constant 0 : index
    %c0_4 = arith.constant 0 : index
    %3 = vector.load %arg2[%c0_3, %c0_4] : memref<16x16xbf16, #tpu.memory_space<vmem>>, vector<16x16xbf16>
    %c0_5 = arith.constant 0 : index
    %c0_6 = arith.constant 0 : index
    %4 = vector.load %arg3[%c0_5, %c0_6] : memref<16x16xbf16, #tpu.memory_space<vmem>>, vector<16x16xbf16>
    %cst = arith.constant dense<0.000000e+00> : vector<16x128xf32>
    %5 = tpu.matmul %3, %1, %cst {dimension_numbers = #tpu.dot_dimension_numbers<[1], [0], [0], [1], [0, 0, 1, 1], [], []>} : vector<16x16xbf16>, vector<16x128xbf16>, vector<16x128xf32> -> vector<16x128xf32>
    %cst_7 = arith.constant dense<0.000000e+00> : vector<16x128xf32>
    %6 = tpu.matmul %4, %1, %cst_7 {dimension_numbers = #tpu.dot_dimension_numbers<[1], [0], [0], [1], [0, 0, 1, 1], [], []>} : vector<16x16xbf16>, vector<16x128xbf16>, vector<16x128xf32> -> vector<16x128xf32>
    %7 = arith.addf %0, %5 : vector<16x128xf32>
    %8 = vector.broadcast %2 : vector<1x128xf32> to vector<16x128xf32>
    %9 = arith.mulf %7, %8 : vector<16x128xf32>
    %10 = arith.addf %0, %6 : vector<16x128xf32>
    %11 = tpu.concatenate %7, %9, %10 in 0 : vector<16x128xf32>, vector<16x128xf32>, vector<16x128xf32> -> vector<48x128xf32>
    %c0_8 = arith.constant 0 : index
    %c0_9 = arith.constant 0 : index
    %12 = vector.load %arg5[%c0_8, %c0_9] : memref<128x128xbf16, #tpu.memory_space<vmem>>, vector<128x128xbf16>
    %c0_10 = arith.constant 0 : index
    %c0_11 = arith.constant 0 : index
    %13 = vector.load %arg6[%c0_10, %c0_11] : memref<1x128xf32, #tpu.memory_space<vmem>>, vector<1x128xf32>
    %c0_12 = arith.constant 0 : index
    %c0_13 = arith.constant 0 : index
    %14 = vector.load %arg7[%c0_12, %c0_13] : memref<128x128xbf16, #tpu.memory_space<vmem>>, vector<128x128xbf16>
    %c0_14 = arith.constant 0 : index
    %c0_15 = arith.constant 0 : index
    %15 = vector.load %arg8[%c0_14, %c0_15] : memref<1x128xf32, #tpu.memory_space<vmem>>, vector<1x128xf32>
    %16 = arith.truncf %11 : vector<48x128xf32> to vector<48x128xbf16>
    %cst_16 = arith.constant dense<0.000000e+00> : vector<48x128xf32>
    %17 = tpu.matmul %16, %12, %cst_16 {dimension_numbers = #tpu.dot_dimension_numbers<[1], [0], [0], [1], [0, 0, 1, 1], [], []>} : vector<48x128xbf16>, vector<128x128xbf16>, vector<48x128xf32> -> vector<48x128xf32>
    %18 = vector.broadcast %13 : vector<1x128xf32> to vector<48x128xf32>
    %19 = arith.addf %17, %18 : vector<48x128xf32>
    %cst_17 = arith.constant 0.000000e+00 : f32
    %20 = vector.broadcast %cst_17 : f32 to vector<48x128xf32>
    %21 = arith.maximumf %19, %20 : vector<48x128xf32>
    %22 = arith.truncf %21 : vector<48x128xf32> to vector<48x128xbf16>
    %cst_18 = arith.constant dense<0.000000e+00> : vector<48x128xf32>
    %23 = tpu.matmul %22, %14, %cst_18 {dimension_numbers = #tpu.dot_dimension_numbers<[1], [0], [0], [1], [0, 0, 1, 1], [], []>} : vector<48x128xbf16>, vector<128x128xbf16>, vector<48x128xf32> -> vector<48x128xf32>
    %24 = vector.broadcast %15 : vector<1x128xf32> to vector<48x128xf32>
    %25 = arith.addf %23, %24 : vector<48x128xf32>
    %cst_19 = arith.constant 0.000000e+00 : f32
    %26 = vector.broadcast %cst_19 : f32 to vector<48x128xf32>
    %27 = arith.maximumf %25, %26 : vector<48x128xf32>
    %28 = vector.extract_strided_slice %27 {offsets = [0, 0], sizes = [16, 128], strides = [1, 1]} : vector<48x128xf32> to vector<16x128xf32>
    %29 = vector.extract_strided_slice %27 {offsets = [16, 0], sizes = [16, 128], strides = [1, 1]} : vector<48x128xf32> to vector<16x128xf32>
    %30 = vector.extract_strided_slice %27 {offsets = [32, 0], sizes = [16, 128], strides = [1, 1]} : vector<48x128xf32> to vector<16x128xf32>
    %31 = tpu.concatenate %28, %29 in 1 : vector<16x128xf32>, vector<16x128xf32> -> vector<16x256xf32>
    %32 = arith.truncf %31 : vector<16x256xf32> to vector<16x256xbf16>
    %cst_20 = arith.constant dense<0.000000e+00> : vector<16x256xf32>
    %33 = tpu.matmul %3, %32, %cst_20 {dimension_numbers = #tpu.dot_dimension_numbers<[1], [0], [0], [1], [0, 0, 1, 1], [], []>} : vector<16x16xbf16>, vector<16x256xbf16>, vector<16x256xf32> -> vector<16x256xf32>
    %34 = arith.truncf %30 : vector<16x128xf32> to vector<16x128xbf16>
    %cst_21 = arith.constant dense<0.000000e+00> : vector<16x128xf32>
    %35 = tpu.matmul %4, %34, %cst_21 {dimension_numbers = #tpu.dot_dimension_numbers<[1], [0], [0], [1], [0, 0, 1, 1], [], []>} : vector<16x16xbf16>, vector<16x128xbf16>, vector<16x128xf32> -> vector<16x128xf32>
    %36 = vector.extract_strided_slice %33 {offsets = [0, 0], sizes = [16, 128], strides = [1, 1]} : vector<16x256xf32> to vector<16x128xf32>
    %37 = arith.addf %28, %36 : vector<16x128xf32>
    %38 = vector.extract_strided_slice %33 {offsets = [0, 128], sizes = [16, 128], strides = [1, 1]} : vector<16x256xf32> to vector<16x128xf32>
    %39 = arith.addf %29, %38 : vector<16x128xf32>
    %40 = arith.addf %30, %35 : vector<16x128xf32>
    %41 = tpu.concatenate %37, %39, %40 in 0 : vector<16x128xf32>, vector<16x128xf32>, vector<16x128xf32> -> vector<48x128xf32>
    %c0_22 = arith.constant 0 : index
    %c0_23 = arith.constant 0 : index
    %42 = vector.load %arg9[%c0_22, %c0_23] : memref<128x128xbf16, #tpu.memory_space<vmem>>, vector<128x128xbf16>
    %c0_24 = arith.constant 0 : index
    %c0_25 = arith.constant 0 : index
    %43 = vector.load %arg10[%c0_24, %c0_25] : memref<1x128xf32, #tpu.memory_space<vmem>>, vector<1x128xf32>
    %c0_26 = arith.constant 0 : index
    %c0_27 = arith.constant 0 : index
    %44 = vector.load %arg11[%c0_26, %c0_27] : memref<128x128xbf16, #tpu.memory_space<vmem>>, vector<128x128xbf16>
    %c0_28 = arith.constant 0 : index
    %c0_29 = arith.constant 0 : index
    %45 = vector.load %arg12[%c0_28, %c0_29] : memref<1x128xf32, #tpu.memory_space<vmem>>, vector<1x128xf32>
    %46 = arith.truncf %41 : vector<48x128xf32> to vector<48x128xbf16>
    %cst_30 = arith.constant dense<0.000000e+00> : vector<48x128xf32>
    %47 = tpu.matmul %46, %42, %cst_30 {dimension_numbers = #tpu.dot_dimension_numbers<[1], [0], [0], [1], [0, 0, 1, 1], [], []>} : vector<48x128xbf16>, vector<128x128xbf16>, vector<48x128xf32> -> vector<48x128xf32>
    %48 = vector.broadcast %43 : vector<1x128xf32> to vector<48x128xf32>
    %49 = arith.addf %47, %48 : vector<48x128xf32>
    %cst_31 = arith.constant 0.000000e+00 : f32
    %50 = vector.broadcast %cst_31 : f32 to vector<48x128xf32>
    %51 = arith.maximumf %49, %50 : vector<48x128xf32>
    %52 = arith.truncf %51 : vector<48x128xf32> to vector<48x128xbf16>
    %cst_32 = arith.constant dense<0.000000e+00> : vector<48x128xf32>
    %53 = tpu.matmul %52, %44, %cst_32 {dimension_numbers = #tpu.dot_dimension_numbers<[1], [0], [0], [1], [0, 0, 1, 1], [], []>} : vector<48x128xbf16>, vector<128x128xbf16>, vector<48x128xf32> -> vector<48x128xf32>
    %54 = vector.broadcast %45 : vector<1x128xf32> to vector<48x128xf32>
    %55 = arith.addf %53, %54 : vector<48x128xf32>
    %cst_33 = arith.constant 0.000000e+00 : f32
    %56 = vector.broadcast %cst_33 : f32 to vector<48x128xf32>
    %57 = arith.maximumf %55, %56 : vector<48x128xf32>
    %c0_34 = arith.constant 0 : index
    %c0_35 = arith.constant 0 : index
    %58 = vector.load %arg13[%c0_34, %c0_35] : memref<48x128xf32, #tpu.memory_space<vmem>>, vector<48x128xf32>
    tpu.vector_store %arg13[%c0_34, %c0_35], %57 {strides = array<i32>} : memref<48x128xf32, #tpu.memory_space<vmem>>, vector<48x128xf32>,
    %c0_36 = arith.constant 0 : index
    %c0_37 = arith.constant 0 : index
    %59 = vector.load %arg4[%c0_36, %c0_37] : memref<24x48xbf16, #tpu.memory_space<vmem>>, vector<24x48xbf16>
    %60 = arith.truncf %57 : vector<48x128xf32> to vector<48x128xbf16>
    %cst_38 = arith.constant dense<0.000000e+00> : vector<24x128xf32>
    %61 = tpu.matmul %59, %60, %cst_38 {dimension_numbers = #tpu.dot_dimension_numbers<[1], [0], [0], [1], [0, 0, 1, 1], [], []>} : vector<24x48xbf16>, vector<48x128xbf16>, vector<24x128xf32> -> vector<24x128xf32>
    %c0_39 = arith.constant 0 : index
    %c0_40 = arith.constant 0 : index
    %62 = vector.load %arg14[%c0_39, %c0_40] : memref<24x128xf32, #tpu.memory_space<vmem>>, vector<24x128xf32>
    tpu.vector_store %arg14[%c0_39, %c0_40], %61 {strides = array<i32>} : memref<24x128xf32, #tpu.memory_space<vmem>>, vector<24x128xf32>,
    return
  }
}

</mosaic_0001>

<bundles_post_ra>
// kernel: tpu_custom_call.1
= control target key start
LH: loop header
LB: loop body
LE: loop exit
PB: predicated region body
PF: predicated region fallthrough
CT: control target
= control target key end

     0   :  { %20 = vsyncpa [#allocation3], 0  ;;  %s1902_s0 = inlined_call_operand.hbm [shape: f32[16,128], index: 0, kind: input, shape index: {}]   ;;  %s1903_s1 = inlined_call_operand.vmem [shape: f32[1,128], index: 1, kind: input, shape index: {}]   ;;  %s1904_s2 = inlined_call_operand.hbm [shape: bf16[16,16], index: 2, kind: input, shape index: {}]   ;;  %s1905_s3 = inlined_call_operand.hbm [shape: bf16[16,16], index: 3, kind: input, shape index: {}]   ;;  %s1906_s4 = inlined_call_operand.vmem [shape: bf16[24,48], index: 4, kind: input, shape index: {}]   ;;  %s1907_s5 = inlined_call_operand.hbm [shape: bf16[128,128], index: 5, kind: input, shape index: {}]   ;;  %s1908_s6 = inlined_call_operand.vmem [shape: f32[1,128], index: 6, kind: input, shape index: {}]   ;;  %s1909_s7 = inlined_call_operand.hbm [shape: bf16[128,128], index: 7, kind: input, shape index: {}]   ;;  %s1910_s8 = inlined_call_operand.vmem [shape: f32[1,128], index: 8, kind: input, shape index: {}]   ;;  %s1911_s9 = inlined_call_operand.hbm [shape: bf16[128,128], index: 9, kind: input, shape index: {}]   ;;  %s1912_s10 = inlined_call_operand.vmem [shape: f32[1,128], index: 10, kind: input, shape index: {}]   ;;  %s1913_s11 = inlined_call_operand.hbm [shape: bf16[128,128], index: 11, kind: input, shape index: {}]   ;;  %s1914_s12 = inlined_call_operand.vmem [shape: f32[1,128], index: 12, kind: input, shape index: {}]   ;;  %s1915_s13 = inlined_call_operand.hbm [shape: f32[48,128], index: 13, kind: output, shape index: {0}]   ;;  %s1916_s14 = inlined_call_operand.hbm [shape: f32[24,128], index: 14, kind: output, shape index: {1}]  }
   0x1   :  { %21 = vsyncpa [#allocation6], 0 }
   0x2   :  { %22 = vsyncpa [#allocation9], 0 }
   0x3   :  { %23 = vsyncpa [#allocation12], 0 }
   0x4   :  { %24 = vsyncpa [#allocation4], 0 }
   0x5   :  { %25 = vsyncpa [#allocation16], 0  ;;  %s1522_s29 = smov [#allocation5]   ;;  %s1312_s17 = scalar_lea.hbm %s1904_s2, 128 }
   0x6   :  { %s45_s30 = sshll.u32 %s1522_s29, 4  ;;  %p1313_p0 = scmp.ne.s32.totalorder %s1904_s2, %s1312_s17  ;;  %s46_s30 = int_to_ptr.vmem [resolvable:$true] %s45_s30 }
   0x7   :  { %p1316_p1 = scmp.lt.u32.totalorder %s1312_s17, %s1904_s2 }
   0x9   :  { %p1318_p2 = pnand %p1316_p1, %p1313_p0 }
   0xb   :  { %1321 = shalt.err (!%p1318_p2)
}
   0xc   :  { %s1322_s22 = scalar_lea.vmem %s46_s30, 128  ;;  %p1327_p4 = scmp.lt.s32.totalorder %s46_s30, %s46_s30 }
   0xd   :  { %p1323_p3 = scmp.ne.s32.totalorder %s46_s30, %s1322_s22  ;;  %p1328_p5 = scmp.lt.s32.totalorder %s1322_s22, %s1322_s22 }
   0xf   :  { %p1329_p6 = por %p1328_p5, %p1327_p4 }
  0x11   :  { %p1330_p7 = pnand %p1329_p6, %p1323_p3 }
  0x13   :  { %1333 = shalt.err (!%p1330_p7)
}
  0x14   :  { %s1523_s23 = smov 64   ;;  %s1524_s24 = smov 4  }
  0x15   :  { %51 = dma.hbm_to_vmem [thread:$0]  %s1904_s2, 128, %s46_s30, [#allocation6], %s1523_s23, %s1523_s23, %s1524_s24  }
  0x16   :  { %s1525_s27 = smov [#allocation8]   ;;  %s1526_s29 = smov [#allocation11]  }
  0x17   :  { %s71_s28 = sshll.u32 %s1525_s27, 4  ;;  %s99_s15 = sshll.u32 %s1526_s29, 4  ;;  %s72_s28 = int_to_ptr.vmem [resolvable:$true] %s71_s28  ;;  %s100_s15 = int_to_ptr.vmem [resolvable:$true] %s99_s15 }
  0x18   :  { %s1334_s18 = scalar_lea.hbm %s1907_s5, 1024 }
  0x19   :  { %p1335_p8 = scmp.ne.s32.totalorder %s1907_s5, %s1334_s18  ;;  %p1338_p9 = scmp.lt.u32.totalorder %s1334_s18, %s1907_s5 }
  0x1b   :  { %p1340_p10 = pnand %p1338_p9, %p1335_p8 }
  0x1d   :  { %1343 = shalt.err (!%p1340_p10)
}
  0x1e   :  { %s1344_s2 = scalar_lea.vmem %s72_s28, 1024  ;;  %p1349_p12 = scmp.lt.s32.totalorder %s72_s28, %s72_s28 }
  0x1f   :  { %p1345_p11 = scmp.ne.s32.totalorder %s72_s28, %s1344_s2  ;;  %p1350_p13 = scmp.lt.s32.totalorder %s1344_s2, %s1344_s2 }
  0x21   :  { %p1351_p0 = por %p1350_p13, %p1349_p12 }
  0x23   :  { %p1352_p1 = pnand %p1351_p0, %p1345_p11 }
  0x25   :  { %1355 = shalt.err (!%p1352_p1)
}
  0x26   :  { %77 = dma.hbm_to_vmem [thread:$0]  %s1907_s5, 1024, %s72_s28, [#allocation9], %s1523_s23, %s1523_s23, %s1524_s24  }
  0x27   :  { %s1356_s29 = scalar_lea.hbm %s1911_s9, 1024 }
  0x28   :  { %p1357_p2 = scmp.ne.s32.totalorder %s1911_s9, %s1356_s29  ;;  %p1360_p3 = scmp.lt.u32.totalorder %s1356_s29, %s1911_s9 }
  0x2a   :  { %p1362_p4 = pnand %p1360_p3, %p1357_p2 }
  0x2c   :  { %1365 = shalt.err (!%p1362_p4)
}
  0x2d   :  { %s1366_s20 = scalar_lea.vmem %s100_s15, 1024  ;;  %p1371_p6 = scmp.lt.s32.totalorder %s100_s15, %s100_s15 }
  0x2e   :  { %p1367_p5 = scmp.ne.s32.totalorder %s100_s15, %s1366_s20  ;;  %p1372_p7 = scmp.lt.s32.totalorder %s1366_s20, %s1366_s20 }
  0x30   :  { %p1373_p8 = por %p1372_p7, %p1371_p6 }
  0x32   :  { %p1374_p9 = pnand %p1373_p8, %p1367_p5 }
  0x34   :  { %1377 = shalt.err (!%p1374_p9)
}
  0x35   :  { %105 = dma.hbm_to_vmem [thread:$0]  %s1911_s9, 1024, %s100_s15, [#allocation12], %s1523_s23, %s1523_s23, %s1524_s24  }
  0x36   :  { %s1527_s21 = smov [#allocation2]   ;;  %s1378_s25 = scalar_lea.hbm %s1902_s0, 256 }
  0x37   :  { %s31_s22 = sshll.u32 %s1527_s21, 4  ;;  %p1379_p10 = scmp.ne.s32.totalorder %s1902_s0, %s1378_s25  ;;  %s32_s22 = int_to_ptr.vmem [resolvable:$true] %s31_s22 }
  0x38   :  { %p1382_p11 = scmp.lt.u32.totalorder %s1378_s25, %s1902_s0 }
  0x3a   :  { %p1384_p12 = pnand %p1382_p11, %p1379_p10 }
  0x3c   :  { %1387 = shalt.err (!%p1384_p12)
}
  0x3d   :  { %s1388_s17 = scalar_lea.vmem %s32_s22, 256  ;;  %p1393_p0 = scmp.lt.s32.totalorder %s32_s22, %s32_s22 }
  0x3e   :  { %p1389_p13 = scmp.ne.s32.totalorder %s32_s22, %s1388_s17  ;;  %p1394_p1 = scmp.lt.s32.totalorder %s1388_s17, %s1388_s17 }
  0x40   :  { %p1395_p2 = por %p1394_p1, %p1393_p0 }
  0x42   :  { %p1396_p3 = pnand %p1395_p2, %p1389_p13 }
  0x44   :  { %1399 = shalt.err (!%p1396_p3)
}
  0x45   :  { %s1528_s9 = smov 128   ;;  %s1529_s15 = smov 8  }
  0x46   :  { %37 = dma.hbm_to_vmem [thread:$0]  %s1902_s0, 256, %s32_s22, [#allocation3], %s1528_s9, %s1528_s9, %s1529_s15  }
  0x47   :  { %s1530_s20 = smov [#allocation7]   ;;  %s1531_s28 = smov [#allocation10]  }
  0x48   :  { %s57_s5 = sshll.u32 %s1530_s20, 4  ;;  %s85_s21 = sshll.u32 %s1531_s28, 4  ;;  %s58_s5 = int_to_ptr.vmem [resolvable:$true] %s57_s5  ;;  %s1673_s21 = int_to_ptr.vmem [resolvable:$true] %s85_s21 }
  0x49   :  { %s1400_s25 = scalar_lea.hbm %s1905_s3, 128 }
  0x4a   :  { %p1401_p4 = scmp.ne.s32.totalorder %s1905_s3, %s1400_s25  ;;  %p1404_p5 = scmp.lt.u32.totalorder %s1400_s25, %s1905_s3 }
  0x4c   :  { %p1406_p6 = pnand %p1404_p5, %p1401_p4 }
  0x4e   :  { %1409 = shalt.err (!%p1406_p6)
}
  0x4f   :  { %s1410_s0 = scalar_lea.vmem %s58_s5, 128  ;;  %p1415_p8 = scmp.lt.s32.totalorder %s58_s5, %s58_s5 }
  0x50   :  { %p1411_p7 = scmp.ne.s32.totalorder %s58_s5, %s1410_s0  ;;  %p1416_p9 = scmp.lt.s32.totalorder %s1410_s0, %s1410_s0 }
  0x52   :  { %p1417_p10 = por %p1416_p9, %p1415_p8 }
  0x54   :  { %p1418_p11 = pnand %p1417_p10, %p1411_p7 }
  0x56   :  { %1421 = shalt.err (!%p1418_p11)
}
  0x57   :  { %63 = dma.hbm_to_vmem [thread:$0]  %s1905_s3, 128, %s58_s5, [#allocation6], %s1523_s23, %s1523_s23, %s1524_s24  }
  0x58   :  { %s1422_s20 = scalar_lea.hbm %s1909_s7, 1024 }
  0x59   :  { %p1423_p12 = scmp.ne.s32.totalorder %s1909_s7, %s1422_s20  ;;  %p1426_p13 = scmp.lt.u32.totalorder %s1422_s20, %s1909_s7 }
  0x5b   :  { %p1428_p0 = pnand %p1426_p13, %p1423_p12 }
  0x5d   :  { %1431 = shalt.err (!%p1428_p0)
}
  0x5e   :  { %s1432_s26 = scalar_lea.vmem %s1673_s21, 1024  ;;  %p1437_p2 = scmp.lt.s32.totalorder %s1673_s21, %s1673_s21 }
  0x5f   :  { %p1433_p1 = scmp.ne.s32.totalorder %s1673_s21, %s1432_s26  ;;  %p1438_p3 = scmp.lt.s32.totalorder %s1432_s26, %s1432_s26 }
  0x61   :  { %p1439_p4 = por %p1438_p3, %p1437_p2 }
  0x63   :  { %p1440_p5 = pnand %p1439_p4, %p1433_p1 }
  0x65   :  { %1443 = shalt.err (!%p1440_p5)
}
  0x66   :  { %91 = dma.hbm_to_vmem [thread:$0]  %s1909_s7, 1024, %s1673_s21, [#allocation9], %s1523_s23, %s1523_s23, %s1524_s24  }
  0x67   :  { %s1532_s27 = smov [#allocation13]   ;;  %s1444_s22 = scalar_lea.hbm %s1913_s11, 1024 }
  0x68   :  { %s113_s29 = sshll.u32 %s1532_s27, 4  ;;  %p1445_p6 = scmp.ne.s32.totalorder %s1913_s11, %s1444_s22  ;;  %s114_s29 = int_to_ptr.vmem [resolvable:$true] %s113_s29 }
  0x69   :  { %p1448_p7 = scmp.lt.u32.totalorder %s1444_s22, %s1913_s11 }
  0x6b   :  { %p1450_p8 = pnand %p1448_p7, %p1445_p6 }
  0x6d   :  { %1453 = shalt.err (!%p1450_p8)
}
  0x6e   :  { %s1454_s28 = scalar_lea.vmem %s114_s29, 1024  ;;  %p1459_p10 = scmp.lt.s32.totalorder %s114_s29, %s114_s29 }
  0x6f   :  { %p1455_p9 = scmp.ne.s32.totalorder %s114_s29, %s1454_s28  ;;  %p1460_p11 = scmp.lt.s32.totalorder %s1454_s28, %s1454_s28 }
  0x71   :  { %p1461_p12 = por %p1460_p11, %p1459_p10 }
  0x73   :  { %p1462_p13 = pnand %p1461_p12, %p1455_p9 }
  0x75   :  { %1465 = shalt.err (!%p1462_p13)
}
  0x76   :  { %119 = dma.hbm_to_vmem [thread:$0]  %s1913_s11, 1024, %s114_s29, [#allocation12], %s1523_s23, %s1523_s23, %s1524_s24  }
  0x77   :  { %1510 = dma.done.wait [#allocation3], 256  }
  0x78   :  { %1511 = vsyncadd [#allocation3], 4294967040 }
  0x79   :  { %1512 = dma.done.wait [#allocation6], 256  }
  0x7a   :  { %1513 = vsyncadd [#allocation6], 4294967040 }
  0x7b   :  { %1514 = dma.done.wait [#allocation9], 2048  }
  0x7c   :  { %1515 = vsyncadd [#allocation9], 4294965248 }
  0x7d   :  { %1516 = dma.done.wait [#allocation12], 2048  }
  0x7e   :  { %1517 = vsyncadd [#allocation12], 4294965248  ;;  %v1533_v0 = vmov 0.0   ;;  %vm1534_vm0 = vmmov 0   ;;  %v144_v1 = vld [vmem:[#allocation2] sm:$0xff]  ;;  %v1731_v2 = vld [vmem:[#allocation2 + $0x8] sm:$0xff] }
  0x7f   :  { %1120 = vmatprep.subr.bf16.mxu0 %v1533_v0  ;;  %1122 = vmatprep.mubr.msk.bf16.mxu0 %vm1534_vm0, %v1533_v0  ;;  %v146_v3 = vpack.c.bf16 %v1731_v2, %v144_v1  ;;  %v1734_v4 = vld [vmem:[#allocation5] sm:$0xff]   ;;  %v1736_v5 = vld [vmem:[#allocation7] sm:$0xff]   ;;  %vm157_vm1 = vcmask 130048   ;;  %v1278_v6 = vld [vmem:[#allocation8] sm:$0xff]   ;;  %vm924_vm2 = vcmask 392192   ;;  %s1536_s27 = smov [#allocation14]  }
  0x80   :  { %1126 = vmatprep.subr.bf16.mxu1 %v1533_v0  ;;  %1128 = vmatprep.mubr.msk.bf16.mxu1 %vm1534_vm0, %v1533_v0  ;;  %v1279_v7 = vld [vmem:[#allocation8 + $0x8] sm:$0xff]   ;;  %v1280_v8 = vld [vmem:[#allocation8 + $0x10] sm:$0xff]   ;;  %v1281_v9 = vld [vmem:[#allocation8 + $0x18] sm:$0xff]   ;;  %s987_s29 = sshll.u32 %s1536_s27, 4  ;;  %s988_s29 = int_to_ptr.vmem [resolvable:$true] %s987_s29 }
  0x81   :  { %1121 = vmatpush3.bf16.msra.mxu0 %v146_v3  ;;  %1127 = vmatpush3.bf16.msra.mxu1 %v146_v3  ;;  %v1282_v10 = vld [vmem:[#allocation8 + $0x20] sm:$0xff]   ;;  %v1283_v11 = vld [vmem:[#allocation8 + $0x28] sm:$0xff]   ;;  %v1284_v12 = vld [vmem:[#allocation8 + $0x30] sm:$0xff]   ;;  %s1466_s16 = scalar_lea.vmem %s988_s29, 768  ;;  %p1471_p1 = scmp.lt.s32.totalorder %s988_s29, %s988_s29 }
  0x82   :  { %1132 = vmatprep.subr.bf16.mxu0 %v1533_v0  ;;  %1160 = vmatprep.subr.bf16.mxu1 %v1533_v0  ;;  %v1285_v13 = vld [vmem:[#allocation8 + $0x38] sm:$0xff]   ;;  %v1286_v14 = vld [vmem:[#allocation10] sm:$0xff]   ;;  %v1287_v15 = vld [vmem:[#allocation10 + $0x8] sm:$0xff]   ;;  %p1467_p0 = scmp.ne.s32.totalorder %s988_s29, %s1466_s16  ;;  %p1472_p2 = scmp.lt.s32.totalorder %s1466_s16, %s1466_s16 }
  0x83   :  { %v1288_v16 = vld [vmem:[#allocation10 + $0x10] sm:$0xff]   ;;  %v1289_v17 = vld [vmem:[#allocation10 + $0x18] sm:$0xff]   ;;  %v1290_v18 = vld [vmem:[#allocation10 + $0x20] sm:$0xff]  }
  0x84   :  { %1123 = vmatmul.mubr.msk.bf16.vlgmr.msra.gmra.mrb[0].mxu0 %vm157_vm1, %v1734_v4  ;;  %1129 = vmatmul.mubr.msk.bf16.vlgmr.msra.gmra.mrb[0].mxu1 %vm157_vm1, %v1736_v5  ;;  %v1291_v19 = vld [vmem:[#allocation10 + $0x28] sm:$0xff]   ;;  %v1022_v26 = vld [vmem:[%s1903_s1] ss:$0 sm:$0xff]  ;;  %v1292_v38 = vld [vmem:[#allocation10 + $0x30] sm:$0xff]   ;;  %p1473_p3 = por %p1472_p2, %p1471_p1 }
  0x85   :  { %1133 = vmatpush3.bf16.msra.mxu0 %v1278_v6  ;;  %1148 = vmatprep.mubr.msk.bf16.mxu0 %vm1534_vm0, %v1533_v0  ;;  %v1293_v39 = vld [vmem:[#allocation10 + $0x38] sm:$0xff]   ;;  %v1023_v40 = vld [vmem:[%s1908_s6] ss:$0 sm:$0xff] }
  0x86   :  { %1134 = vmatprep.subr.bf16.mxu0 %v1533_v0  ;;  %1176 = vmatprep.mubr.msk.bf16.mxu1 %vm1534_vm0, %v1533_v0  ;;  %p1474_p4 = pnand %p1473_p3, %p1467_p0 }
  0x87   :  { %1161 = vmatpush3.bf16.msra.mxu1 %v1286_v14 }
  0x88   :  { %1162 = vmatprep.subr.bf16.mxu1 %v1533_v0 }
  0x89   :  { %1135 = vmatpush3.bf16.msra.mxu0 %v1279_v7  ;;  %v1535_v7 = vmov 0  }
  0x8a   :  { %1136 = vmatprep.subr.bf16.mxu0 %v1533_v0 }
  0x8b   :  { %1163 = vmatpush3.bf16.msra.mxu1 %v1287_v15 }
  0x8c   :  { %1164 = vmatprep.subr.bf16.mxu1 %v1533_v0 }
  0x8d   :  { %1137 = vmatpush3.bf16.msra.mxu0 %v1280_v8 }
  0x8e   :  { %1138 = vmatprep.subr.bf16.mxu0 %v1533_v0 }
  0x8f   :  { %1165 = vmatpush3.bf16.msra.mxu1 %v1288_v16 }
  0x90   :  { %1166 = vmatprep.subr.bf16.mxu1 %v1533_v0 }
  0x91   :  { %1139 = vmatpush3.bf16.msra.mxu0 %v1281_v9 }
  0x92   :  { %1140 = vmatprep.subr.bf16.mxu0 %v1533_v0 }
  0x93   :  { %1167 = vmatpush3.bf16.msra.mxu1 %v1289_v17 }
  0x94   :  { %1168 = vmatprep.subr.bf16.mxu1 %v1533_v0 }
  0x95   :  { %1141 = vmatpush3.bf16.msra.mxu0 %v1282_v10 }
  0x96   :  { %1142 = vmatprep.subr.bf16.mxu0 %v1533_v0 }
  0x97   :  { %1169 = vmatpush3.bf16.msra.mxu1 %v1290_v18 }
  0x98   :  { %1170 = vmatprep.subr.bf16.mxu1 %v1533_v0 }
  0x99   :  { %1143 = vmatpush3.bf16.msra.mxu0 %v1283_v11 }
  0x9a   :  { %1144 = vmatprep.subr.bf16.mxu0 %v1533_v0 }
  0x9b   :  { %1171 = vmatpush3.bf16.msra.mxu1 %v1291_v19 }
  0x9c   :  { %1172 = vmatprep.subr.bf16.mxu1 %v1533_v0 }
  0x9d   :  { %1145 = vmatpush3.bf16.msra.mxu0 %v1284_v12  ;;  %v1032_v12 = vld [vmem:[%s1910_s8] ss:$0 sm:$0xff] }
  0x9e   :  { %1146 = vmatprep.subr.bf16.mxu0 %v1533_v0 }
  0x9f   :  { %1173 = vmatpush3.bf16.msra.mxu1 %v1292_v38  ;;  %v1296_v38 = vld [vmem:[#allocation11 + $0x10] sm:$0xff]  }
  0xa0   :  { %1174 = vmatprep.subr.bf16.mxu1 %v1533_v0 }
  0xa1   :  { %1147 = vmatpush3.bf16.msra.mxu0 %v1285_v13 }
  0xa3   :  { %1175 = vmatpush3.bf16.msra.mxu1 %v1293_v39  ;;  %v1298_v39 = vld [vmem:[#allocation11 + $0x20] sm:$0xff]  }
  0xa4   :  { %1188 = vmatprep.subr.bf16.mxu1 %v1533_v0 }
 0x157   :  { %v195_v20 = vpop.f32.mrb[0].mxu0  ;;  %v244_v21 = vpop.f32.mrb[0].mxu1 }
 0x158   :  { %v251_v22 = vadd.f32 %v195_v20, %v144_v1  ;;  %v1124_v23 = vpop.f32.mrb[1].mxu0  ;;  %v261_v24 = vadd.f32 %v244_v21, %v144_v1  ;;  %v1130_v25 = vpop.f32.mrb[1].mxu1 }
 0x159   :  { %v198_v27 = vpop.f32.mrb[2].mxu0  ;;  %v247_v28 = vpop.f32.mrb[2].mxu1 }
 0x15a   :  { %v252_v29 = vadd.f32 %v198_v27, %v1731_v2  ;;  %v1125_v30 = vpop.f32.mrb[3].mxu0  ;;  %v262_v31 = vadd.f32 %v247_v28, %v1731_v2  ;;  %v1131_v32 = vpop.f32.mrb[3].mxu1  ;;  %v259_v33 = vmul.f32 %v1022_v26, %v251_v22 }
 0x15c   :  { %v260_v34 = vmul.f32 %v1022_v26, %v252_v29  ;;  %v297_v35 = vpack.c.bf16 %v252_v29, %v251_v22  ;;  %v299_v36 = vpack.c.bf16 %v262_v31, %v261_v24  ;;  %v1294_v31 = vld [vmem:[#allocation11] sm:$0xff]  }
 0x15e   :  { %1149 = vmatmul.mubr.bf16.vlgmr.msra.gmra.mrb[4].mxu0 %v297_v35  ;;  %v298_v37 = vpack.c.bf16 %v260_v34, %v259_v33 }
 0x15f   :  { %1152 = vmatprep.mubr.msk.bf16.mxu0 %vm1534_vm0, %v1533_v0 }
 0x166   :  { %1153 = vmatmul.mubr.bf16.gmra.mrb[8].mxu0 %v298_v37 }
 0x167   :  { %1156 = vmatprep.mubr.msk.bf16.mxu0 %vm1534_vm0, %v1533_v0 }
 0x16e   :  { %1157 = vmatmul.mubr.bf16.gmra.mrb[12].mxu0 %v299_v36  ;;  %v1295_v36 = vld [vmem:[#allocation11 + $0x8] sm:$0xff]  }
 0x16f   :  { %571 = vmatprep.mubr.bf16.mxu0 %v1535_v7 }
 0x231   :  { %v388_v41 = vpop.f32.mrb[4].mxu0 }
 0x232   :  { %v389_v42 = vadd.f32 %v1023_v40, %v388_v41  ;;  %v1150_v43 = vpop.f32.mrb[5].mxu0  ;;  %v1300_v41 = vld [vmem:[#allocation11 + $0x30] sm:$0xff]  }
 0x233   :  { %v391_v44 = vpop.f32.mrb[6].mxu0  ;;  %v1303_v43 = vld [vmem:[#allocation13 + $0x8] sm:$0xff]  }
 0x234   :  { %v392_v45 = vadd.f32 %v1023_v40, %v391_v44  ;;  %v1151_v46 = vpop.f32.mrb[7].mxu0  ;;  %v411_v47 = vmax.f32 %v389_v42, 0.0  ;;  %v1302_v42 = vld [vmem:[#allocation13] sm:$0xff]   ;;  %v1304_v44 = vld [vmem:[#allocation13 + $0x10] sm:$0xff]  }
 0x235   :  { %v1306_v46 = vld [vmem:[#allocation13 + $0x20] sm:$0xff]  }
 0x236   :  { %v412_v48 = vmax.f32 %v392_v45, 0.0  ;;  %v1305_v45 = vld [vmem:[#allocation13 + $0x18] sm:$0xff]  }
 0x238   :  { %v417_v49 = vpack.c.bf16 %v412_v48, %v411_v47  ;;  %v1307_v47 = vld [vmem:[#allocation13 + $0x28] sm:$0xff]  }
 0x239   :  { %v396_v50 = vpop.f32.mrb[8].mxu0 }
 0x23a   :  { %v397_v51 = vadd.f32 %v1023_v40, %v396_v50  ;;  %v1154_v52 = vpop.f32.mrb[9].mxu0  ;;  %1177 = vmatmul.mubr.bf16.vlgmr.msra.gmra.mrb[4].mxu1 %v417_v49 }
 0x23b   :  { %v399_v53 = vpop.f32.mrb[10].mxu0  ;;  %1180 = vmatprep.mubr.msk.bf16.mxu1 %vm1534_vm0, %v1533_v0 }
 0x23c   :  { %v400_v54 = vadd.f32 %v1023_v40, %v399_v53  ;;  %v1155_v55 = vpop.f32.mrb[11].mxu0  ;;  %v413_v56 = vmax.f32 %v397_v51, 0.0 }
 0x23e   :  { %v414_v57 = vmax.f32 %v400_v54, 0.0 }
 0x240   :  { %v418_v58 = vpack.c.bf16 %v414_v57, %v413_v56 }
 0x241   :  { %v404_v59 = vpop.f32.mrb[12].mxu0 }
 0x242   :  { %v405_v60 = vadd.f32 %v1023_v40, %v404_v59  ;;  %v1158_v61 = vpop.f32.mrb[13].mxu0  ;;  %1181 = vmatmul.mubr.bf16.gmra.mrb[8].mxu1 %v418_v58 }
 0x243   :  { %v407_v62 = vpop.f32.mrb[14].mxu0  ;;  %1184 = vmatprep.mubr.msk.bf16.mxu1 %vm1534_vm0, %v1533_v0 }
 0x244   :  { %v415_v63 = vmax.f32 %v405_v60, 0.0  ;;  %v408_v1 = vadd.f32 %v1023_v40, %v407_v62  ;;  %v1159_v2 = vpop.f32.mrb[15].mxu0  ;;  %v1299_v40 = vld [vmem:[#allocation11 + $0x28] sm:$0xff]  }
 0x245   :  { %v1308_v2 = vld [vmem:[#allocation13 + $0x30] sm:$0xff]  }
 0x246   :  { %v416_v3 = vmax.f32 %v408_v1, 0.0 }
 0x248   :  { %v419_v6 = vpack.c.bf16 %v416_v3, %v415_v63  ;;  %v1309_v3 = vld [vmem:[#allocation13 + $0x38] sm:$0xff]  }
 0x24a   :  { %1185 = vmatmul.mubr.bf16.gmra.mrb[12].mxu1 %v419_v6  ;;  %v1043_v6 = vld [vmem:[%s1912_s10] ss:$0 sm:$0xff] }
 0x24b   :  { %1190 = vmatprep.mubr.msk.bf16.mxu1 %vm1534_vm0, %v1533_v0 }
 0x30d   :  { %v508_v8 = vpop.f32.mrb[4].mxu1 }
 0x30e   :  { %v1178_v9 = vpop.f32.mrb[5].mxu1  ;;  %v1788_v17 = vadd.f32 %v1032_v12, %v508_v8 }
 0x30f   :  { %v511_v10 = vpop.f32.mrb[6].mxu1 }
 0x310   :  { %v1179_v11 = vpop.f32.mrb[7].mxu1  ;;  %v1784_v13 = vadd.f32 %v1032_v12, %v511_v10  ;;  %v531_v24 = vmax.f32 %v1788_v17, 0.0 }
 0x312   :  { %v532_v21 = vmax.f32 %v1784_v13, 0.0 }
 0x314   :  { %v537_v26 = vpack.c.bf16 %v532_v21, %v531_v24 }
 0x315   :  { %v516_v14 = vpop.f32.mrb[8].mxu1 }
 0x316   :  { %v1786_v15 = vadd.f32 %v1032_v12, %v516_v14  ;;  %v1182_v16 = vpop.f32.mrb[9].mxu1 }
 0x317   :  { %v519_v18 = vpop.f32.mrb[10].mxu1 }
 0x318   :  { %v1790_v19 = vadd.f32 %v1032_v12, %v519_v18  ;;  %v1183_v20 = vpop.f32.mrb[11].mxu1  ;;  %v533_v22 = vmax.f32 %v1786_v15, 0.0 }
 0x31a   :  { %v534_v23 = vmax.f32 %v1790_v19, 0.0 }
 0x31c   :  { %v538_v25 = vpack.c.bf16 %v534_v23, %v533_v22 }
 0x31d   :  { %v524_v27 = vpop.f32.mrb[12].mxu1 }
 0x31e   :  { %v1804_v28 = vadd.f32 %v1032_v12, %v524_v27  ;;  %v1186_v29 = vpop.f32.mrb[13].mxu1  ;;  %539 = vmatprep.subr.bf16.mxu0 %v538_v25 }
 0x31f   :  { %v527_v30 = vpop.f32.mrb[14].mxu1  ;;  %540 = vmatpush1.bf16.msra.mxu0 %v537_v26 }
 0x320   :  { %v535_v32 = vmax.f32 %v1804_v28, 0.0  ;;  %v1807_v33 = vadd.f32 %v1032_v12, %v527_v30  ;;  %v1187_v34 = vpop.f32.mrb[15].mxu1  ;;  %1194 = vmatprep.subr.bf16.mxu0 %v1533_v0 }
 0x321   :  { %v1310_v34 = vld [vmem:[%s1906_s4] sm:$0xff]  }
 0x322   :  { %v536_v35 = vmax.f32 %v1807_v33, 0.0  ;;  %1041 = vmatmul.mubr.msk.bf16.vlgmr.msra.gmra.mrb[16].mxu0 %vm157_vm1, %v1734_v4  ;;  %v1297_v4 = vld [vmem:[#allocation11 + $0x18] sm:$0xff]  }
 0x323   :  { %1195 = vmatpush3.bf16.msra.mxu0 %v1294_v31  ;;  %1210 = vmatprep.mubr.msk.bf16.mxu0 %vm1534_vm0, %v1533_v0 }
 0x324   :  { %v582_v37 = vpack.c.bf16 %v536_v35, %v535_v32  ;;  %1196 = vmatprep.subr.bf16.mxu0 %v1533_v0 }
 0x326   :  { %1189 = vmatpush3.bf16.msra.mxu1 %v582_v37 }
 0x327   :  { %1197 = vmatpush3.bf16.msra.mxu0 %v1295_v36  ;;  %1222 = vmatprep.subr.bf16.mxu1 %v1533_v0 }
 0x328   :  { %1198 = vmatprep.subr.bf16.mxu0 %v1533_v0 }
 0x329   :  { %1191 = vmatmul.mubr.msk.bf16.vlgmr.msra.gmra.mrb[16].mxu1 %vm157_vm1, %v1736_v5  ;;  %v1301_v5 = vld [vmem:[#allocation11 + $0x38] sm:$0xff]  }
 0x32a   :  { %1238 = vmatprep.mubr.msk.bf16.mxu1 %vm1534_vm0, %v1533_v0  ;;  %1223 = vmatpush3.bf16.msra.mxu1 %v1302_v42 }
 0x32b   :  { %1199 = vmatpush3.bf16.msra.mxu0 %v1296_v38  ;;  %1224 = vmatprep.subr.bf16.mxu1 %v1533_v0 }
 0x32c   :  { %1200 = vmatprep.subr.bf16.mxu0 %v1533_v0 }
 0x32e   :  { %1225 = vmatpush3.bf16.msra.mxu1 %v1303_v43 }
 0x32f   :  { %1201 = vmatpush3.bf16.msra.mxu0 %v1297_v4  ;;  %1226 = vmatprep.subr.bf16.mxu1 %v1533_v0 }
 0x330   :  { %1202 = vmatprep.subr.bf16.mxu0 %v1533_v0 }
 0x332   :  { %1227 = vmatpush3.bf16.msra.mxu1 %v1304_v44 }
 0x333   :  { %1203 = vmatpush3.bf16.msra.mxu0 %v1298_v39  ;;  %1228 = vmatprep.subr.bf16.mxu1 %v1533_v0 }
 0x334   :  { %1204 = vmatprep.subr.bf16.mxu0 %v1533_v0 }
 0x336   :  { %1229 = vmatpush3.bf16.msra.mxu1 %v1305_v45 }
 0x337   :  { %1205 = vmatpush3.bf16.msra.mxu0 %v1299_v40  ;;  %1230 = vmatprep.subr.bf16.mxu1 %v1533_v0 }
 0x338   :  { %1206 = vmatprep.subr.bf16.mxu0 %v1533_v0 }
 0x33a   :  { %1231 = vmatpush3.bf16.msra.mxu1 %v1306_v46 }
 0x33b   :  { %1207 = vmatpush3.bf16.msra.mxu0 %v1300_v41  ;;  %1232 = vmatprep.subr.bf16.mxu1 %v1533_v0 }
 0x33c   :  { %1208 = vmatprep.subr.bf16.mxu0 %v1533_v0 }
 0x33e   :  { %1233 = vmatpush3.bf16.msra.mxu1 %v1307_v47 }
 0x33f   :  { %1209 = vmatpush3.bf16.msra.mxu0 %v1301_v5  ;;  %1234 = vmatprep.subr.bf16.mxu1 %v1533_v0 }
 0x342   :  { %1235 = vmatpush3.bf16.msra.mxu1 %v1308_v2 }
 0x343   :  { %1236 = vmatprep.subr.bf16.mxu1 %v1533_v0 }
 0x346   :  { %1237 = vmatpush3.bf16.msra.mxu1 %v1309_v3 }
 0x3f5   :  { %v573_v48 = vpop.f32.mrb[16].mxu0 }
 0x3f6   :  { %v575_v49 = vpop.f32.mrb[17].mxu0  ;;  %v624_v51 = vadd.f32 %v573_v48, %v531_v24 }
 0x3f7   :  { %v577_v50 = vpop.f32.mrb[18].mxu0  ;;  %v626_v54 = vadd.f32 %v575_v49, %v533_v22 }
 0x3f8   :  { %v625_v52 = vadd.f32 %v577_v50, %v532_v21  ;;  %v579_v53 = vpop.f32.mrb[19].mxu0 }
 0x3f9   :  { %v627_v55 = vadd.f32 %v579_v53, %v534_v23 }
 0x3fa   :  { %v664_v56 = vpack.c.bf16 %v625_v52, %v624_v51 }
 0x3fb   :  { %v665_v57 = vpack.c.bf16 %v627_v55, %v626_v54 }
 0x3fc   :  { %v617_v58 = vpop.f32.mrb[16].mxu1  ;;  %1211 = vmatmul.mubr.bf16.vlgmr.msra.gmra.mrb[20].mxu0 %v664_v56 }
 0x3fd   :  { %v1192_v59 = vpop.f32.mrb[17].mxu1  ;;  %1214 = vmatprep.mubr.msk.bf16.mxu0 %vm1534_vm0, %v1533_v0  ;;  %v628_v61 = vadd.f32 %v617_v58, %v535_v32 }
 0x3fe   :  { %v620_v60 = vpop.f32.mrb[18].mxu1 }
 0x3ff   :  { %v629_v62 = vadd.f32 %v620_v60, %v536_v35  ;;  %v1193_v63 = vpop.f32.mrb[19].mxu1  ;;  %v1052_v35 = vld [vmem:[%s1914_s12] ss:$0 sm:$0xff]  ;;  %v1311_v60 = vld [vmem:[%s1906_s4 + $0x8] ss:$0 sps:$4 sm:$0xff]  }
 0x401   :  { %v666_v1 = vpack.c.bf16 %v629_v62, %v628_v61 }
 0x404   :  { %1215 = vmatmul.mubr.bf16.gmra.mrb[24].mxu0 %v665_v57 }
 0x405   :  { %1218 = vmatprep.mubr.msk.bf16.mxu0 %vm1534_vm0, %v1533_v0 }
 0x40c   :  { %1219 = vmatmul.mubr.bf16.gmra.mrb[28].mxu0 %v666_v1 }
 0x40d   :  { %1256 = vmatprep.mubr.msk.bf16.mxu0 %vm924_vm2, %v1310_v34 }
 0x4cf   :  { %v755_v7 = vpop.f32.mrb[20].mxu0 }
 0x4d0   :  { %v756_v8 = vadd.f32 %v1043_v6, %v755_v7  ;;  %v1212_v9 = vpop.f32.mrb[21].mxu0 }
 0x4d1   :  { %v758_v10 = vpop.f32.mrb[22].mxu0 }
 0x4d2   :  { %v759_v11 = vadd.f32 %v1043_v6, %v758_v10  ;;  %v1213_v12 = vpop.f32.mrb[23].mxu0  ;;  %v778_v13 = vmax.f32 %v756_v8, 0.0 }
 0x4d4   :  { %v779_v14 = vmax.f32 %v759_v11, 0.0 }
 0x4d6   :  { %v784_v15 = vpack.c.bf16 %v779_v14, %v778_v13 }
 0x4d7   :  { %v763_v16 = vpop.f32.mrb[24].mxu0 }
 0x4d8   :  { %v764_v17 = vadd.f32 %v1043_v6, %v763_v16  ;;  %v1216_v18 = vpop.f32.mrb[25].mxu0  ;;  %1239 = vmatmul.mubr.bf16.vlgmr.msra.gmra.mrb[20].mxu1 %v784_v15 }
 0x4d9   :  { %v766_v19 = vpop.f32.mrb[26].mxu0  ;;  %1242 = vmatprep.mubr.msk.bf16.mxu1 %vm1534_vm0, %v1533_v0 }
 0x4da   :  { %v767_v20 = vadd.f32 %v1043_v6, %v766_v19  ;;  %v1217_v21 = vpop.f32.mrb[27].mxu0  ;;  %v780_v22 = vmax.f32 %v764_v17, 0.0 }
 0x4dc   :  { %v781_v23 = vmax.f32 %v767_v20, 0.0 }
 0x4de   :  { %v785_v24 = vpack.c.bf16 %v781_v23, %v780_v22 }
 0x4df   :  { %v771_v25 = vpop.f32.mrb[28].mxu0 }
 0x4e0   :  { %v772_v26 = vadd.f32 %v1043_v6, %v771_v25  ;;  %v1220_v27 = vpop.f32.mrb[29].mxu0  ;;  %1243 = vmatmul.mubr.bf16.gmra.mrb[24].mxu1 %v785_v24 }
 0x4e1   :  { %v774_v28 = vpop.f32.mrb[30].mxu0  ;;  %1246 = vmatprep.mubr.msk.bf16.mxu1 %vm1534_vm0, %v1533_v0 }
 0x4e2   :  { %v775_v29 = vadd.f32 %v1043_v6, %v774_v28  ;;  %v1221_v30 = vpop.f32.mrb[31].mxu0  ;;  %v782_v31 = vmax.f32 %v772_v26, 0.0 }
 0x4e4   :  { %v783_v32 = vmax.f32 %v775_v29, 0.0 }
 0x4e6   :  { %v786_v33 = vpack.c.bf16 %v783_v32, %v782_v31 }
 0x4e8   :  { %1247 = vmatmul.mubr.bf16.gmra.mrb[28].mxu1 %v786_v33 }
 0x5ab   :  { %v875_v36 = vpop.f32.mrb[20].mxu1 }
 0x5ac   :  { %v876_v37 = vadd.f32 %v1052_v35, %v875_v36  ;;  %v1240_v0 = vpop.f32.mrb[21].mxu1 }
 0x5ad   :  { %v878_v38 = vpop.f32.mrb[22].mxu1 }
 0x5ae   :  { %v898_v4 = vmax.f32 %v876_v37, 0.0  ;;  %v879_v39 = vadd.f32 %v1052_v35, %v878_v38  ;;  %v1241_v40 = vpop.f32.mrb[23].mxu1 }
 0x5b0   :  { %904 = vst [vmem:[#allocation14] sm:$0xff] %v898_v4  ;;  %v899_v41 = vmax.f32 %v879_v39, 0.0 }
 0x5b2   :  { %905 = vst [vmem:[#allocation14 + $0x8] sm:$0xff] %v899_v41  ;;  %v913_v5 = vpack.c.bf16 %v899_v41, %v898_v4 }
 0x5b3   :  { %v883_v42 = vpop.f32.mrb[24].mxu1 }
 0x5b4   :  { %v884_v43 = vadd.f32 %v1052_v35, %v883_v42  ;;  %v1244_v44 = vpop.f32.mrb[25].mxu1  ;;  %1250 = vmatprep.subr.bf16.mxu0 %v913_v5 }
 0x5b5   :  { %v886_v45 = vpop.f32.mrb[26].mxu1  ;;  %1251 = vmatpush3.bf16.msra.mxu0 %v913_v5 }
 0x5b6   :  { %v900_v46 = vmax.f32 %v884_v43, 0.0  ;;  %v887_v47 = vadd.f32 %v1052_v35, %v886_v45  ;;  %v1245_v48 = vpop.f32.mrb[27].mxu1 }
 0x5b8   :  { %906 = vst [vmem:[#allocation14 + $0x10] sm:$0xff] %v900_v46  ;;  %v901_v49 = vmax.f32 %v887_v47, 0.0 }
 0x5ba   :  { %907 = vst [vmem:[#allocation14 + $0x18] sm:$0xff] %v901_v49  ;;  %v914_v50 = vpack.c.bf16 %v901_v49, %v900_v46 }
 0x5bb   :  { %v891_v51 = vpop.f32.mrb[28].mxu1 }
 0x5bc   :  { %v892_v52 = vadd.f32 %v1052_v35, %v891_v51  ;;  %v1248_v53 = vpop.f32.mrb[29].mxu1  ;;  %1252 = vmatprep.subr.bf16.mxu0 %v914_v50 }
 0x5bd   :  { %v894_v54 = vpop.f32.mrb[30].mxu1  ;;  %1253 = vmatpush3.bf16.msra.mxu0 %v914_v50 }
 0x5be   :  { %v902_v55 = vmax.f32 %v892_v52, 0.0  ;;  %v895_v56 = vadd.f32 %v1052_v35, %v894_v54  ;;  %v1249_v57 = vpop.f32.mrb[31].mxu1 }
 0x5c0   :  { %908 = vst [vmem:[#allocation14 + $0x20] sm:$0xff] %v902_v55  ;;  %v903_v58 = vmax.f32 %v895_v56, 0.0 }
 0x5c2   :  { %909 = vst [vmem:[#allocation14 + $0x28] sm:$0xff] %v903_v58  ;;  %v915_v59 = vpack.c.bf16 %v903_v58, %v902_v55 }
 0x5c4   :  { %1254 = vmatprep.subr.bf16.mxu0 %v915_v59 }
 0x5c5   :  { %1255 = vmatpush3.bf16.msra.mxu0 %v915_v59 }
 0x5c8   :  { %1257 = vmatmul.mubr.msk.bf16.vlgmr.msra.gmra.mrb[32].mxu0 %vm924_vm2, %v1311_v60 }
 0x5c9   :  { %1477 = shalt.err (!%p1474_p4)
}
 0x5ca   :  { %s1478_s17 = scalar_lea.hbm %s1915_s13, 768 }
 0x5cb   :  { %p1479_p5 = scmp.ne.s32.totalorder %s1915_s13, %s1478_s17  ;;  %p1482_p6 = scmp.lt.u32.totalorder %s1478_s17, %s1915_s13 }
 0x5cd   :  { %p1484_p7 = pnand %p1482_p6, %p1479_p5 }
 0x5cf   :  { %1487 = shalt.err (!%p1484_p7)
}
 0x5d0   :  { %993 = dma.vmem_to_hbm [thread:$0]  %s988_s29, 768, %s1915_s13, [#allocation4], %s1528_s9, %s1528_s9, %s1529_s15  }
 0x5d1   :  { %s1537_s21 = smov [#allocation15]  }
 0x5d2   :  { %s999_s11 = sshll.u32 %s1537_s21, 4  ;;  %s1000_s11 = int_to_ptr.vmem [resolvable:$true] %s999_s11 }
 0x5d3   :  { %s1488_s23 = scalar_lea.vmem %s1000_s11, 384  ;;  %p1493_p9 = scmp.lt.s32.totalorder %s1000_s11, %s1000_s11 }
 0x5d4   :  { %p1489_p8 = scmp.ne.s32.totalorder %s1000_s11, %s1488_s23  ;;  %p1494_p10 = scmp.lt.s32.totalorder %s1488_s23, %s1488_s23 }
 0x5d6   :  { %p1495_p11 = por %p1494_p10, %p1493_p9 }
 0x5d8   :  { %p1496_p12 = pnand %p1495_p11, %p1489_p8 }
 0x69b   :  { %v1258_v61 = vpop.f32.mrb[32].mxu0 }
 0x69c   :  { %981 = vst [vmem:[#allocation15 + $0x10] sm:$0xff] %v1258_v61  ;;  %v965_v62 = vpop.f32.mrb[33].mxu0 }
 0x69d   :  { %979 = vst [vmem:[#allocation15] sm:$0xff] %v965_v62  ;;  %v1259_v63 = vpop.f32.mrb[34].mxu0 }
 0x69e   :  { %v968_v1 = vpop.f32.mrb[35].mxu0 }
 0x69f   :  { %980 = vst [vmem:[#allocation15 + $0x8] sm:$0xff] %v968_v1 }
 0x6a0   :  { %1499 = shalt.err (!%p1496_p12)
}
 0x6a1   :  { %s1500_s13 = scalar_lea.hbm %s1916_s14, 384 }
 0x6a2   :  { %p1501_p13 = scmp.ne.s32.totalorder %s1916_s14, %s1500_s13  ;;  %p1504_p0 = scmp.lt.u32.totalorder %s1500_s13, %s1916_s14 }
 0x6a4   :  { %p1506_p1 = pnand %p1504_p0, %p1501_p13 }
 0x6a6   :  { %1509 = shalt.err (!%p1506_p1)
}
 0x6a7   :  { %1005 = dma.vmem_to_hbm [thread:$0]  %s1000_s11, 384, %s1916_s14, [#allocation16], %s1528_s9, %s1528_s9, %s1529_s15  }
 0x6a8   :  { %1518 = dma.done.wait [#allocation4], 768  }
 0x6a9   :  { %1519 = vsyncadd [#allocation4], 4294966528 }
 0x6aa   :  { %1520 = dma.done.wait [#allocation16], 384  }
 0x6ab   :  { %1521 = vsyncadd [#allocation16], 4294966912 }
 0x6ac   :  { %1012 = vsyncpa [#allocation3], 1 }
 0x6ad   :  { %1013 = vsyncpa [#allocation6], 1 }
 0x6ae   :  { %1014 = vsyncpa [#allocation9], 1 }
 0x6af   :  { %1015 = vsyncpa [#allocation12], 1 }
 0x6b0   :  { %1016 = vsyncpa [#allocation4], 1 }
 0x6b1   :  { %1017 = vsyncpa [#allocation16], 1 }

</bundles_post_ra>
